<compile_context>
chip_gen: v7x
topology: tpu7x:2x2x1
jax: 0.10.0
libtpu: 0.0.40
codegen_flags: <defaults>
</compile_context>

<pallas_src>
import functools
import math

import jax
import jax.numpy as jnp
from jax.experimental import pallas as pl
from jax.experimental.pallas import tpu as pltpu


def one_dim_conv_block_kernel(
    x_ref, wa_ref, ba_ref,
    scale1_ref, shift1_ref,
    wf1_ref, bf1_ref, wf2_ref, bf2_ref,
    scale2_ref, shift2_ref,
    w2_ref, b2_ref,
    o_ref, *, in_channel):
  x = x_ref[...].astype(jnp.float32)

  # --- OneDimAttention(q=x, k=x, v=x) ---
  att = (x * x) * (1.0 / math.sqrt(float(in_channel)))
  att = jnp.dot(att.astype(jnp.bfloat16), wa_ref[...],
                preferred_element_type=jnp.float32) + ba_ref[...]
  # softmax over the last (lane) axis; denominator via EUP approx reciprocal.
  m = jnp.max(att, axis=-1, keepdims=True)
  e = jnp.exp(att - m)
  denom = jnp.sum(e, axis=-1, keepdims=True)
  p = e * pl.reciprocal(denom, approx=True)
  h = p * x

  # --- batchnorm1 (eval: per-channel affine with folded running stats) ---
  h1 = (x + h) * scale1_ref[...] + shift1_ref[...]

  # --- ffn: Linear -> ReLU -> Linear -> ReLU ---
  z = jnp.dot(h1.astype(jnp.bfloat16), wf1_ref[...],
              preferred_element_type=jnp.float32) + bf1_ref[...]
  z = jnp.maximum(z, 0.0)
  z = jnp.dot(z.astype(jnp.bfloat16), wf2_ref[...],
              preferred_element_type=jnp.float32) + bf2_ref[...]
  z = jnp.maximum(z, 0.0)

  # --- batchnorm2 + linear2 (dropout is identity in eval mode) ---
  h2 = (h1 + z) * scale2_ref[...] + shift2_ref[...]
  out = jnp.dot(h2.astype(jnp.bfloat16), w2_ref[...],
                preferred_element_type=jnp.float32) + b2_ref[...]
  o_ref[...] = out.astype(o_ref.dtype)


def _vmem_limit_bytes():
  """Raise the scoped-VMEM cap above the 16/32 MiB defaults, clamped below physical VMEM."""
  try:
    cap = pltpu.get_tpu_info().vmem_capacity_bytes
  except Exception:  # conservative fallback (v7x has only 64 MiB per TC)
    cap = 64 * 1024 * 1024
  return min(110 * 1024 * 1024, int(cap * 0.9))


def one_dim_conv_block(x, wa, ba, scale1, shift1, wf1, bf1, wf2, bf2,
                       scale2, shift2, w2, b2, *, block_rows=256):
  N, C = x.shape
  C_out = w2.shape[1]
  tm = min(block_rows, N)
  assert N % tm == 0, "batch must be a multiple of the row tile"

  # bf16 weights: half the HBM traffic / VMEM footprint, native MXU rate.
  wa, wf1, wf2, w2 = (w.astype(jnp.bfloat16) for w in (wa, wf1, wf2, w2))

  params = (wa, ba, scale1, shift1, wf1, bf1, wf2, bf2, scale2, shift2, w2, b2)

  def resident(a):
    # Constant block index across the N grid => stays in VMEM, no per-step re-DMA.
    return pl.BlockSpec(a.shape, lambda i: (0, 0))

  in_specs = [pl.BlockSpec((tm, C), lambda i: (i, 0))] + [resident(p) for p in params]

  kernel = functools.partial(one_dim_conv_block_kernel, in_channel=C)
  return pl.pallas_call(
      kernel,
      out_shape=jax.ShapeDtypeStruct((N, C_out), x.dtype),
      grid_spec=pltpu.PrefetchScalarGridSpec(
          num_scalar_prefetch=0,
          grid=(N // tm,),
          in_specs=in_specs,
          # lane-dense (C_out multiple of 128) unmasked stores
          out_specs=pl.BlockSpec((tm, C_out), lambda i: (i, 0)),
      ),
      compiler_params=pltpu.CompilerParams(
          dimension_semantics=("parallel",),
          vmem_limit_bytes=_vmem_limit_bytes()),
  )(x, *params)


def reference_forward(x, wa, ba, scale1, shift1, wf1, bf1, wf2, bf2,
                      scale2, shift2, w2, b2):
  C = x.shape[1]
  att = (x * x) / jnp.sqrt(jnp.float32(C))
  att = att @ wa + ba
  p = jax.nn.softmax(att, axis=-1)
  h = p * x
  h1 = (x + h) * scale1 + shift1
  z = jnp.maximum(h1 @ wf1 + bf1, 0.0)
  z = jnp.maximum(z @ wf2 + bf2, 0.0)
  h2 = (h1 + z) * scale2 + shift2
  return h2 @ w2 + b2


if __name__ == "__main__":
  # Small stand-in for in_channel=out_channel=2048 (keep lane dims multiples of 128).
  N, C, C_OUT = 32, 128, 128
  TM = 8  # multi-step grid at this small size; real deployments use the default 256

  key = jax.random.PRNGKey(0)
  keys = jax.random.split(key, 8)
  x = jax.random.normal(keys[0], (N, C), jnp.float32)

  def linear_init(k, cin, cout):
    kw, kb = jax.random.split(k)
    bound = 1.0 / math.sqrt(cin)
    w = jax.random.uniform(kw, (cin, cout), jnp.float32, -bound, bound)
    b = jax.random.uniform(kb, (1, cout), jnp.float32, -bound, bound)
    return w, b

  def bn_init(k, c, eps=1e-5):
    kg, kb, km, kv = jax.random.split(k, 4)
    gamma = 1.0 + 0.1 * jax.random.normal(kg, (c,), jnp.float32)
    beta = 0.1 * jax.random.normal(kb, (c,), jnp.float32)
    rmean = 0.1 * jax.random.normal(km, (c,), jnp.float32)
    rvar = jnp.abs(jax.random.normal(kv, (c,), jnp.float32)) + 0.5
    inv_std = 1.0 / jnp.sqrt(rvar + eps)
    scale = (gamma * inv_std).reshape(1, c)
    shift = (beta - rmean * gamma * inv_std).reshape(1, c)
    return scale, shift

  wa, ba = linear_init(keys[1], C, C)       # attention_conv.linear
  wf1, bf1 = linear_init(keys[2], C, C)     # ffn[0]
  wf2, bf2 = linear_init(keys[3], C, C)     # ffn[2]
  w2, b2 = linear_init(keys[4], C, C_OUT)   # linear2
  scale1, shift1 = bn_init(keys[5], C)      # batchnorm1 (eval, folded)
  scale2, shift2 = bn_init(keys[6], C)      # batchnorm2 (eval, folded)

  params = (wa, ba, scale1, shift1, wf1, bf1, wf2, bf2, scale2, shift2, w2, b2)

  out = one_dim_conv_block(x, *params, block_rows=TM)
  out = jax.block_until_ready(out)

  ref = reference_forward(x, *params)  # pure f32 reference
  assert out.shape == (N, C_OUT)
  # bf16 matmul inputs + approx softmax reciprocal vs f32 reference -> loosened tolerance.
  assert jnp.allclose(out, ref, atol=3e-2, rtol=3e-2), "mismatch vs pure-JAX reference"
  print("KERNEL_OK")
</pallas_src>

<mosaic_0001>
module attributes {stable_mosaic.version = 11 : i64} {
  func.func @one_dim_conv_block_kernel(%arg0: i32, %arg1: memref<8x128xf32, #tpu.memory_space<vmem>>, %arg2: memref<128x128xbf16, #tpu.memory_space<vmem>>, %arg3: memref<1x128xf32, #tpu.memory_space<vmem>>, %arg4: memref<1x128xf32, #tpu.memory_space<vmem>>, %arg5: memref<1x128xf32, #tpu.memory_space<vmem>>, %arg6: memref<128x128xbf16, #tpu.memory_space<vmem>>, %arg7: memref<1x128xf32, #tpu.memory_space<vmem>>, %arg8: memref<128x128xbf16, #tpu.memory_space<vmem>>, %arg9: memref<1x128xf32, #tpu.memory_space<vmem>>, %arg10: memref<1x128xf32, #tpu.memory_space<vmem>>, %arg11: memref<1x128xf32, #tpu.memory_space<vmem>>, %arg12: memref<128x128xbf16, #tpu.memory_space<vmem>>, %arg13: memref<1x128xf32, #tpu.memory_space<vmem>>, %arg14: memref<8x128xf32, #tpu.memory_space<vmem>>) attributes {dimension_semantics = [#tpu.dimension_semantics<parallel>], iteration_bounds = array<i64: 4>, scalar_prefetch = 0 : i64, scratch_operands = 0 : i64, tpu.core_type = #tpu.core_type<tc>, window_params = [{transform_indices = @transform_0, window_bounds = array<i64: 8, 128>}, {pipeline_mode = #tpu.pipeline_mode<synchronous>, transform_indices = @transform_1, window_bounds = array<i64: 128, 128>}, {pipeline_mode = #tpu.pipeline_mode<synchronous>, transform_indices = @transform_2, window_bounds = array<i64: 1, 128>}, {pipeline_mode = #tpu.pipeline_mode<synchronous>, transform_indices = @transform_3, window_bounds = array<i64: 1, 128>}, {pipeline_mode = #tpu.pipeline_mode<synchronous>, transform_indices = @transform_4, window_bounds = array<i64: 1, 128>}, {pipeline_mode = #tpu.pipeline_mode<synchronous>, transform_indices = @transform_5, window_bounds = array<i64: 128, 128>}, {pipeline_mode = #tpu.pipeline_mode<synchronous>, transform_indices = @transform_6, window_bounds = array<i64: 1, 128>}, {pipeline_mode = #tpu.pipeline_mode<synchronous>, transform_indices = @transform_7, window_bounds = array<i64: 128, 128>}, {pipeline_mode = #tpu.pipeline_mode<synchronous>, transform_indices = @transform_8, window_bounds = array<i64: 1, 128>}, {pipeline_mode = #tpu.pipeline_mode<synchronous>, transform_indices = @transform_9, window_bounds = array<i64: 1, 128>}, {pipeline_mode = #tpu.pipeline_mode<synchronous>, transform_indices = @transform_10, window_bounds = array<i64: 1, 128>}, {pipeline_mode = #tpu.pipeline_mode<synchronous>, transform_indices = @transform_11, window_bounds = array<i64: 128, 128>}, {pipeline_mode = #tpu.pipeline_mode<synchronous>, transform_indices = @transform_12, window_bounds = array<i64: 1, 128>}, {transform_indices = @transform_13, window_bounds = array<i64: 8, 128>}]} {
    %c0 = arith.constant 0 : index
    %c0_0 = arith.constant 0 : index
    %0 = vector.load %arg1[%c0, %c0_0] : memref<8x128xf32, #tpu.memory_space<vmem>>, vector<8x128xf32>
    %1 = arith.mulf %0, %0 : vector<8x128xf32>
    %cst = arith.constant 0.0883883461 : f32
    %2 = vector.broadcast %cst : f32 to vector<8x128xf32>
    %3 = arith.mulf %1, %2 : vector<8x128xf32>
    %4 = arith.truncf %3 : vector<8x128xf32> to vector<8x128xbf16>
    %c0_1 = arith.constant 0 : index
    %c0_2 = arith.constant 0 : index
    %5 = vector.load %arg2[%c0_1, %c0_2] : memref<128x128xbf16, #tpu.memory_space<vmem>>, vector<128x128xbf16>
    %cst_3 = arith.constant dense<0.000000e+00> : vector<8x128xf32>
    %6 = tpu.matmul %4, %5, %cst_3 {dimension_numbers = #tpu.dot_dimension_numbers<[1], [0], [0], [1], [0, 0, 1, 1], [], []>} : vector<8x128xbf16>, vector<128x128xbf16>, vector<8x128xf32> -> vector<8x128xf32>
    %c0_4 = arith.constant 0 : index
    %c0_5 = arith.constant 0 : index
    %7 = vector.load %arg3[%c0_4, %c0_5] : memref<1x128xf32, #tpu.memory_space<vmem>>, vector<1x128xf32>
    %8 = vector.broadcast %7 : vector<1x128xf32> to vector<8x128xf32>
    %9 = arith.addf %6, %8 : vector<8x128xf32>
    %cst_6 = arith.constant dense<0xFF800000> : vector<8xf32>
    %10 = vector.multi_reduction <maximumf>, %9, %cst_6 [1] : vector<8x128xf32> to vector<8xf32>
    %11 = vector.shape_cast %10 : vector<8xf32> to vector<8x1xf32>
    %12 = vector.broadcast %11 : vector<8x1xf32> to vector<8x128xf32>
    %13 = arith.subf %9, %12 : vector<8x128xf32>
    %14 = math.exp %13 : vector<8x128xf32>
    %cst_7 = arith.constant dense<0.000000e+00> : vector<8xf32>
    %15 = vector.multi_reduction <add>, %14, %cst_7 [1] : vector<8x128xf32> to vector<8xf32>
    %16 = vector.shape_cast %15 : vector<8xf32> to vector<8x1xf32>
    %17 = tpu.reciprocal %16 {approx = true} : vector<8x1xf32> -> vector<8x1xf32>
    %18 = vector.broadcast %17 : vector<8x1xf32> to vector<8x128xf32>
    %19 = arith.mulf %14, %18 : vector<8x128xf32>
    %20 = arith.mulf %19, %0 : vector<8x128xf32>
    %21 = arith.addf %0, %20 : vector<8x128xf32>
    %c0_8 = arith.constant 0 : index
    %c0_9 = arith.constant 0 : index
    %22 = vector.load %arg4[%c0_8, %c0_9] : memref<1x128xf32, #tpu.memory_space<vmem>>, vector<1x128xf32>
    %23 = vector.broadcast %22 : vector<1x128xf32> to vector<8x128xf32>
    %24 = arith.mulf %21, %23 : vector<8x128xf32>
    %c0_10 = arith.constant 0 : index
    %c0_11 = arith.constant 0 : index
    %25 = vector.load %arg5[%c0_10, %c0_11] : memref<1x128xf32, #tpu.memory_space<vmem>>, vector<1x128xf32>
    %26 = vector.broadcast %25 : vector<1x128xf32> to vector<8x128xf32>
    %27 = arith.addf %24, %26 : vector<8x128xf32>
    %28 = arith.truncf %27 : vector<8x128xf32> to vector<8x128xbf16>
    %c0_12 = arith.constant 0 : index
    %c0_13 = arith.constant 0 : index
    %29 = vector.load %arg6[%c0_12, %c0_13] : memref<128x128xbf16, #tpu.memory_space<vmem>>, vector<128x128xbf16>
    %cst_14 = arith.constant dense<0.000000e+00> : vector<8x128xf32>
    %30 = tpu.matmul %28, %29, %cst_14 {dimension_numbers = #tpu.dot_dimension_numbers<[1], [0], [0], [1], [0, 0, 1, 1], [], []>} : vector<8x128xbf16>, vector<128x128xbf16>, vector<8x128xf32> -> vector<8x128xf32>
    %c0_15 = arith.constant 0 : index
    %c0_16 = arith.constant 0 : index
    %31 = vector.load %arg7[%c0_15, %c0_16] : memref<1x128xf32, #tpu.memory_space<vmem>>, vector<1x128xf32>
    %32 = vector.broadcast %31 : vector<1x128xf32> to vector<8x128xf32>
    %33 = arith.addf %30, %32 : vector<8x128xf32>
    %cst_17 = arith.constant 0.000000e+00 : f32
    %34 = vector.broadcast %cst_17 : f32 to vector<8x128xf32>
    %35 = arith.maximumf %33, %34 : vector<8x128xf32>
    %36 = arith.truncf %35 : vector<8x128xf32> to vector<8x128xbf16>
    %c0_18 = arith.constant 0 : index
    %c0_19 = arith.constant 0 : index
    %37 = vector.load %arg8[%c0_18, %c0_19] : memref<128x128xbf16, #tpu.memory_space<vmem>>, vector<128x128xbf16>
    %cst_20 = arith.constant dense<0.000000e+00> : vector<8x128xf32>
    %38 = tpu.matmul %36, %37, %cst_20 {dimension_numbers = #tpu.dot_dimension_numbers<[1], [0], [0], [1], [0, 0, 1, 1], [], []>} : vector<8x128xbf16>, vector<128x128xbf16>, vector<8x128xf32> -> vector<8x128xf32>
    %c0_21 = arith.constant 0 : index
    %c0_22 = arith.constant 0 : index
    %39 = vector.load %arg9[%c0_21, %c0_22] : memref<1x128xf32, #tpu.memory_space<vmem>>, vector<1x128xf32>
    %40 = vector.broadcast %39 : vector<1x128xf32> to vector<8x128xf32>
    %41 = arith.addf %38, %40 : vector<8x128xf32>
    %cst_23 = arith.constant 0.000000e+00 : f32
    %42 = vector.broadcast %cst_23 : f32 to vector<8x128xf32>
    %43 = arith.maximumf %41, %42 : vector<8x128xf32>
    %44 = arith.addf %27, %43 : vector<8x128xf32>
    %c0_24 = arith.constant 0 : index
    %c0_25 = arith.constant 0 : index
    %45 = vector.load %arg10[%c0_24, %c0_25] : memref<1x128xf32, #tpu.memory_space<vmem>>, vector<1x128xf32>
    %46 = vector.broadcast %45 : vector<1x128xf32> to vector<8x128xf32>
    %47 = arith.mulf %44, %46 : vector<8x128xf32>
    %c0_26 = arith.constant 0 : index
    %c0_27 = arith.constant 0 : index
    %48 = vector.load %arg11[%c0_26, %c0_27] : memref<1x128xf32, #tpu.memory_space<vmem>>, vector<1x128xf32>
    %49 = vector.broadcast %48 : vector<1x128xf32> to vector<8x128xf32>
    %50 = arith.addf %47, %49 : vector<8x128xf32>
    %51 = arith.truncf %50 : vector<8x128xf32> to vector<8x128xbf16>
    %c0_28 = arith.constant 0 : index
    %c0_29 = arith.constant 0 : index
    %52 = vector.load %arg12[%c0_28, %c0_29] : memref<128x128xbf16, #tpu.memory_space<vmem>>, vector<128x128xbf16>
    %cst_30 = arith.constant dense<0.000000e+00> : vector<8x128xf32>
    %53 = tpu.matmul %51, %52, %cst_30 {dimension_numbers = #tpu.dot_dimension_numbers<[1], [0], [0], [1], [0, 0, 1, 1], [], []>} : vector<8x128xbf16>, vector<128x128xbf16>, vector<8x128xf32> -> vector<8x128xf32>
    %c0_31 = arith.constant 0 : index
    %c0_32 = arith.constant 0 : index
    %54 = vector.load %arg13[%c0_31, %c0_32] : memref<1x128xf32, #tpu.memory_space<vmem>>, vector<1x128xf32>
    %55 = vector.broadcast %54 : vector<1x128xf32> to vector<8x128xf32>
    %56 = arith.addf %53, %55 : vector<8x128xf32>
    %c0_33 = arith.constant 0 : index
    %c0_34 = arith.constant 0 : index
    %57 = vector.load %arg14[%c0_33, %c0_34] : memref<8x128xf32, #tpu.memory_space<vmem>>, vector<8x128xf32>
    tpu.vector_store %arg14[%c0_33, %c0_34], %56 {strides = array<i32>} : memref<8x128xf32, #tpu.memory_space<vmem>>, vector<8x128xf32>,
    return
  }
  func.func @transform_0(%arg0: i32) -> (i32, i32) {
    %c0_i32 = arith.constant 0 : i32
    %c0_i32_0 = arith.constant 0 : i32
    return %arg0, %c0_i32 : i32, i32
  }
  func.func @transform_1(%arg0: i32) -> (i32, i32) {
    %c0_i32 = arith.constant 0 : i32
    %c0_i32_0 = arith.constant 0 : i32
    %c0_i32_1 = arith.constant 0 : i32
    return %c0_i32, %c0_i32_0 : i32, i32
  }
  func.func @transform_2(%arg0: i32) -> (i32, i32) {
    %c0_i32 = arith.constant 0 : i32
    %c0_i32_0 = arith.constant 0 : i32
    %c0_i32_1 = arith.constant 0 : i32
    return %c0_i32, %c0_i32_0 : i32, i32
  }
  func.func @transform_3(%arg0: i32) -> (i32, i32) {
    %c0_i32 = arith.constant 0 : i32
    %c0_i32_0 = arith.constant 0 : i32
    %c0_i32_1 = arith.constant 0 : i32
    return %c0_i32, %c0_i32_0 : i32, i32
  }
  func.func @transform_4(%arg0: i32) -> (i32, i32) {
    %c0_i32 = arith.constant 0 : i32
    %c0_i32_0 = arith.constant 0 : i32
    %c0_i32_1 = arith.constant 0 : i32
    return %c0_i32, %c0_i32_0 : i32, i32
  }
  func.func @transform_5(%arg0: i32) -> (i32, i32) {
    %c0_i32 = arith.constant 0 : i32
    %c0_i32_0 = arith.constant 0 : i32
    %c0_i32_1 = arith.constant 0 : i32
    return %c0_i32, %c0_i32_0 : i32, i32
  }
  func.func @transform_6(%arg0: i32) -> (i32, i32) {
    %c0_i32 = arith.constant 0 : i32
    %c0_i32_0 = arith.constant 0 : i32
    %c0_i32_1 = arith.constant 0 : i32
    return %c0_i32, %c0_i32_0 : i32, i32
  }
  func.func @transform_7(%arg0: i32) -> (i32, i32) {
    %c0_i32 = arith.constant 0 : i32
    %c0_i32_0 = arith.constant 0 : i32
    %c0_i32_1 = arith.constant 0 : i32
    return %c0_i32, %c0_i32_0 : i32, i32
  }
  func.func @transform_8(%arg0: i32) -> (i32, i32) {
    %c0_i32 = arith.constant 0 : i32
    %c0_i32_0 = arith.constant 0 : i32
    %c0_i32_1 = arith.constant 0 : i32
    return %c0_i32, %c0_i32_0 : i32, i32
  }
  func.func @transform_9(%arg0: i32) -> (i32, i32) {
    %c0_i32 = arith.constant 0 : i32
    %c0_i32_0 = arith.constant 0 : i32
    %c0_i32_1 = arith.constant 0 : i32
    return %c0_i32, %c0_i32_0 : i32, i32
  }
  func.func @transform_10(%arg0: i32) -> (i32, i32) {
    %c0_i32 = arith.constant 0 : i32
    %c0_i32_0 = arith.constant 0 : i32
    %c0_i32_1 = arith.constant 0 : i32
    return %c0_i32, %c0_i32_0 : i32, i32
  }
  func.func @transform_11(%arg0: i32) -> (i32, i32) {
    %c0_i32 = arith.constant 0 : i32
    %c0_i32_0 = arith.constant 0 : i32
    %c0_i32_1 = arith.constant 0 : i32
    return %c0_i32, %c0_i32_0 : i32, i32
  }
  func.func @transform_12(%arg0: i32) -> (i32, i32) {
    %c0_i32 = arith.constant 0 : i32
    %c0_i32_0 = arith.constant 0 : i32
    %c0_i32_1 = arith.constant 0 : i32
    return %c0_i32, %c0_i32_0 : i32, i32
  }
  func.func @transform_13(%arg0: i32) -> (i32, i32) {
    %c0_i32 = arith.constant 0 : i32
    %c0_i32_0 = arith.constant 0 : i32
    return %arg0, %c0_i32 : i32, i32
  }
}

</mosaic_0001>

<bundles_post_ra>
// kernel: tpu_custom_call.1
= control target key start
LH: loop header
LB: loop body
LE: loop exit
PB: predicated region body
PF: predicated region fallthrough
CT: control target
= control target key end

     0   :  { %s2100_s0 = inlined_call_operand.hbm [shape: f32[32,128], index: 0, kind: input, shape index: {}]   ;;  %s2101_s1 = inlined_call_operand.hbm [shape: bf16[128,128], index: 1, kind: input, shape index: {}]   ;;  %s2102_s2 = inlined_call_operand.vmem [shape: f32[1,128], index: 2, kind: input, shape index: {}]   ;;  %s2103_s3 = inlined_call_operand.vmem [shape: f32[1,128], index: 3, kind: input, shape index: {}]   ;;  %s2104_s4 = inlined_call_operand.vmem [shape: f32[1,128], index: 4, kind: input, shape index: {}]   ;;  %s2105_s5 = inlined_call_operand.hbm [shape: bf16[128,128], index: 5, kind: input, shape index: {}]   ;;  %s2106_s6 = inlined_call_operand.vmem [shape: f32[1,128], index: 6, kind: input, shape index: {}]   ;;  %s2107_s7 = inlined_call_operand.hbm [shape: bf16[128,128], index: 7, kind: input, shape index: {}]   ;;  %s2108_s8 = inlined_call_operand.vmem [shape: f32[1,128], index: 8, kind: input, shape index: {}]   ;;  %s2109_s9 = inlined_call_operand.vmem [shape: f32[1,128], index: 9, kind: input, shape index: {}]   ;;  %s2110_s10 = inlined_call_operand.vmem [shape: f32[1,128], index: 10, kind: input, shape index: {}]   ;;  %s2111_s11 = inlined_call_operand.hbm [shape: bf16[128,128], index: 11, kind: input, shape index: {}]   ;;  %s2112_s12 = inlined_call_operand.vmem [shape: f32[1,128], index: 12, kind: input, shape index: {}]   ;;  %s2113_s13 = inlined_call_operand.hbm [shape: f32[32,128], index: 13, kind: output, shape index: {}]  }
   0x1   :  { %2118 = sst [smem:[#allocation16_spill]] %s2101_s1 }
   0x2   :  { %2119 = sst [smem:[#allocation17_spill]] %s2108_s8 }
   0x3   :  { %2120 = sst [smem:[#allocation18_spill]] %s2109_s9 }
   0x4   :  { %2121 = sst [smem:[#allocation19_spill]] %s2110_s10 }
   0x5   :  { %2122 = sst [smem:[#allocation20_spill]] %s2112_s12 }
   0x6   :  { %2123 = sst [smem:[#allocation21_spill]] %s2113_s13 }
   0x7   :  { %18 = vsyncpa [#allocation3], 0 }
   0x8   :  { %20 = vsyncpa [#allocation3 + $0x1], 0 }
   0x9   :  { %21 = vsyncpa [#allocation6], 0 }
   0xa   :  { %22 = vsyncpa [#allocation9], 0 }
   0xb   :  { %23 = vsyncpa [#allocation4], 0 }
   0xc   :  { %25 = vsyncpa [#allocation4 + $0x1], 0  ;;  %s1736_s25 = smov 0   ;;  %s1738_s26 = smov 0  }
   0xd   :  { %s1740_s27 = smov 0   ;;  %s1742_s28 = smov 0  }
   0xe LB: > { %s1656_s29 = smov [#allocation5]   ;;  %s1757_s14 = sadd.s32 4294967295, %s1654_s28   ;;  %s1654_s28 = sphi %s1742_s28, %s2149_s28   ;;  %s1650_s27 = sphi %s1740_s27, %s2148_s27   ;;  %s1646_s26 = sphi %s1738_s26, %s2147_s26   ;;  %s1642_s25 = sphi %s1736_s25, %s2146_s25  }
   0xf   : > { %s352_s30 = sshll.u32 %s1656_s29, 4  ;;  %p1136_p0 = scmp.ge.s32.totalorder %s1654_s28, 1  ;;  %s1762_s30 = int_to_ptr.vmem [resolvable:$true] %s352_s30 }
  0x10   : > { %p2115_p1 = scmp.eq.s32.totalorder %s1757_s14, 0  ;;  %p340_p2 = scmp.lt.s32.totalorder %s1654_s28, 5 }
  0x11   : > { %s1657_s16 = smov [#allocation8]   ;;  %s1658_s19 = smov [#allocation7]  }
  0x12   : > { %p1764_p3 = pnand %p1136_p0, %p340_p2  ;;  %s390_s17 = sshll.u32 %s1657_s16, 4  ;;  %s1776_s17 = int_to_ptr.vmem [resolvable:$true] %s390_s17 }
  0x13   : > { %s374_s20 = sshll.u32 %s1658_s19, 4  ;;  %s2126_s1 = sld [smem:[#allocation16_spill]]  ;;  %s1778_s20 = int_to_ptr.vmem [resolvable:$true] %s374_s20 }
  0x14   : > { %s2124_s15 = scalar_select %p1764_p3, 1, 0 }
  0x15   : > { %p1331_p4 = pneg %p1764_p3 }
  0x17   : > { %p1772_p5 = pnand %p1331_p4, %p2115_p1 }
  0x19   : > { %s1438_s23 = scalar_lea.hbm %s2126_s1, 1024  ;;  %p1788_p7 = pneg %p1772_p5 }
  0x1a   : > { %p1439_p6 = scmp.ne.s32.totalorder %s2126_s1, %s1438_s23  ;;  %p1445_p10 = scmp.lt.u32.totalorder %s1438_s23, %s2126_s1 }
  0x1c   : > { %p1441_p8 = pnand %p1788_p7, %p1439_p6 }
  0x1e   : > { %p1442_p9 = pneg %p1441_p8 }
  0x20   : > { %p1447_p11 = pnand %p1445_p10, %p1442_p9 }
  0x22   : > { %1450 = shalt.err (!%p1447_p11)
}
  0x23   : > { %s1451_s21 = scalar_lea.vmem %s1762_s30, 1024  ;;  %p1459_p2 = scmp.lt.s32.totalorder %s1762_s30, %s1762_s30 }
  0x24   : > { %p1452_p12 = scmp.ne.s32.totalorder %s1762_s30, %s1451_s21  ;;  %p1460_p4 = scmp.lt.s32.totalorder %s1451_s21, %s1451_s21 }
  0x26   : > { %p1454_p13 = pnand %p1452_p12, %p1788_p7  ;;  %p1461_p6 = por %p1460_p4, %p1459_p2 }
  0x28   : > { %p1455_p0 = pneg %p1454_p13 }
  0x2a   : > { %p1462_p8 = pnand %p1461_p6, %p1455_p0 }
  0x2c   : > { %1465 = shalt.err (!%p1462_p8)
}
  0x2d   : > { %s1659_s22 = smov 64   ;;  %s1660_s13 = smov 4  }
  0x2e   : > { %1334 = dma.hbm_to_vmem [thread:$0]  (!%p1772_p5), %s2126_s1, 1024, %s1762_s30, [#allocation6], %s1659_s22, %s1659_s22, %s1660_s13  }
  0x2f   : > { %s1466_s21 = scalar_lea.hbm %s2107_s7, 1024 }
  0x30   : > { %p1467_p9 = scmp.ne.s32.totalorder %s2107_s7, %s1466_s21  ;;  %p1473_p12 = scmp.lt.u32.totalorder %s1466_s21, %s2107_s7 }
  0x32   : > { %p1469_p10 = pnand %p1467_p9, %p1788_p7 }
  0x34   : > { %p1470_p11 = pneg %p1469_p10 }
  0x36   : > { %p1475_p13 = pnand %p1473_p12, %p1470_p11 }
  0x38   : > { %1478 = shalt.err (!%p1475_p13)
}
  0x39   : > { %s1479_s30 = scalar_lea.vmem %s1776_s17, 1024  ;;  %p1487_p6 = scmp.lt.s32.totalorder %s1776_s17, %s1776_s17 }
  0x3a   : > { %p1480_p0 = scmp.ne.s32.totalorder %s1776_s17, %s1479_s30  ;;  %p1488_p8 = scmp.lt.s32.totalorder %s1479_s30, %s1479_s30 }
  0x3c   : > { %p1482_p2 = pnand %p1480_p0, %p1788_p7  ;;  %p1489_p9 = por %p1488_p8, %p1487_p6 }
  0x3e   : > { %p1483_p4 = pneg %p1482_p2 }
  0x40   : > { %p1490_p10 = pnand %p1489_p9, %p1483_p4 }
  0x42   : > { %1493 = shalt.err (!%p1490_p10)
}
  0x43   : > { %1340 = dma.hbm_to_vmem [thread:$0]  (!%p1772_p5), %s2107_s7, 1024, %s1776_s17, [#allocation9], %s1659_s22, %s1659_s22, %s1660_s13  }
  0x44   : > { %s1494_s23 = scalar_lea.hbm %s2105_s5, 1024 }
  0x45   : > { %p1495_p11 = scmp.ne.s32.totalorder %s2105_s5, %s1494_s23  ;;  %p1501_p0 = scmp.lt.u32.totalorder %s1494_s23, %s2105_s5 }
  0x47   : > { %p1497_p12 = pnand %p1495_p11, %p1788_p7 }
  0x49   : > { %p1498_p13 = pneg %p1497_p12 }
  0x4b   : > { %p1503_p2 = pnand %p1501_p0, %p1498_p13 }
  0x4d   : > { %1506 = shalt.err (!%p1503_p2)
}
  0x4e   : > { %s1507_s17 = scalar_lea.vmem %s1778_s20, 1024  ;;  %p1515_p9 = scmp.lt.s32.totalorder %s1778_s20, %s1778_s20 }
  0x4f   : > { %p1508_p4 = scmp.ne.s32.totalorder %s1778_s20, %s1507_s17  ;;  %p1516_p10 = scmp.lt.s32.totalorder %s1507_s17, %s1507_s17 }
  0x51   : > { %p1510_p6 = pnand %p1508_p4, %p1788_p7  ;;  %p1517_p11 = por %p1516_p10, %p1515_p9 }
  0x53   : > { %p1511_p8 = pneg %p1510_p6 }
  0x55   : > { %p1518_p12 = pnand %p1517_p11, %p1511_p8 }
  0x57   : > { %1521 = shalt.err (!%p1518_p12)
}
  0x58   : > { %1337 = dma.hbm_to_vmem [thread:$0]  (!%p1772_p5), %s2105_s5, 1024, %s1778_s20, [#allocation6], %s1659_s22, %s1659_s22, %s1660_s13  }
  0x59   : > { %s1661_s9 = smov [#allocation10]   ;;  %s1522_s24 = scalar_lea.hbm %s2111_s11, 1024 }
  0x5a   : > { %s412_s10 = sshll.u32 %s1661_s9, 4  ;;  %p1523_p13 = scmp.ne.s32.totalorder %s2111_s11, %s1522_s24  ;;  %s413_s10 = int_to_ptr.vmem [resolvable:$true] %s412_s10 }
  0x5b   : > { %p1529_p4 = scmp.lt.u32.totalorder %s1522_s24, %s2111_s11 }
  0x5c   : > { %p1525_p0 = pnand %p1523_p13, %p1788_p7 }
  0x5e   : > { %p1526_p2 = pneg %p1525_p0 }
  0x60   : > { %p1531_p6 = pnand %p1529_p4, %p1526_p2 }
  0x62   : > { %1534 = shalt.err (!%p1531_p6)
}
  0x63   : > { %s1535_s20 = scalar_lea.vmem %s413_s10, 1024  ;;  %p1543_p11 = scmp.lt.s32.totalorder %s413_s10, %s413_s10 }
  0x64   : > { %p1536_p8 = scmp.ne.s32.totalorder %s413_s10, %s1535_s20  ;;  %p1544_p12 = scmp.lt.s32.totalorder %s1535_s20, %s1535_s20 }
  0x66   : > { %p1538_p9 = pnand %p1536_p8, %p1788_p7  ;;  %p1545_p1 = por %p1544_p12, %p1543_p11 }
  0x68   : > { %p1539_p10 = pneg %p1538_p9 }
  0x6a   : > { %p1546_p3 = pnand %p1545_p1, %p1539_p10 }
  0x6c   : > { %1549 = shalt.err (!%p1546_p3)
}
  0x6d   : > { %1343 = dma.hbm_to_vmem [thread:$0]  (!%p1772_p5), %s2111_s11, 1024, %s413_s10, [#allocation9], %s1659_s22, %s1659_s22, %s1660_s13  }
  0x6e   : > { %s1135_s18 = sadd.s32 4294967294, %s1654_s28   ;;  %s1887_s16 = sadd.s32 1, %s1654_s28  }
  0x6f   : > { %s35_s9 = ssub.s32 %s1654_s28, %s1887_s16  ;;  %s38_s12 = sadd.s32 1, %s1650_s27 }
  0x70   : > { %p36_p1 = scmp.eq.s32.totalorder %s35_s9, 0  ;;  %p45_p3 = scmp.ne.s32.totalorder %s1650_s27, %s1646_s26 }
  0x71   : > { %p46_p7 = scmp.eq.s32.totalorder %s1654_s28, 0  ;;  %p51_p13 = scmp.ne.s32.totalorder %s1646_s26, %s1642_s25 }
  0x72   : > { %s1898_s23 = scalar_select %p36_p1, %s1650_s27, %s38_s12  }
  0x73   : > { %p1900_p0 = por %p46_p7, %p45_p3  ;;  %p2129_p2 = scmp.eq.s32.totalorder %s1757_s14, 0 }
  0x74   : > { %p327_p4 = scmp.eq.s32.totalorder %s1757_s14, 3  ;;  %p333_p6 = scmp.eq.s32.totalorder %s1135_s18, 3 }
  0x75   : > { %p1906_p5 = por %p2129_p2, %p51_p13  ;;  %p1356_p8 = scmp.lt.s32.totalorder %s1654_s28, 4 }
  0x76   : > { %s429_s13 = sand.u32 1, %s1650_s27   ;;  %p1913_p9 = por %p327_p4, %p45_p3 }
  0x77   : > { %p1917_p10 = por %p333_p6, %p51_p13  ;;  %s1142_s19 = sshll.u32 %s429_s13, 3 }
  0x78   : > { %s2131_s10 = scalar_select %p1913_p9, 1, 0 }
  0x79   : > { %s2132_s29 = scalar_select %p1917_p10, 1, 0 }
  0x7a   : > { %s1143_s21 = sshll.u32 %s1654_s28, 7  ;;  %s433_s8 = scalar_lea.vmem [#allocation2], %s1142_s19 }
  0x7b   : > { %s1925_s30 = scalar_lea.hbm %s2100_s0, %s1143_s21  ;;  %s440_s18 = sshll.u32 %s433_s8, 4  ;;  %s1927_s18 = int_to_ptr.vmem [resolvable:$true] %s440_s18 }
  0x7c   : > { %p1931_p11 = pnand %p1356_p8, %p1900_p0  ;;  %s430_s12 = scalar_lea.sflag [#allocation3], %s429_s13 }
  0x7d   : > { %s1550_s1 = scalar_lea.hbm %s1925_s30, 128  ;;  %s1555_s17 = scalar_lea.hbm %s2100_s0, 512 }
  0x7e   : > { %p1551_p12 = scmp.ne.s32.totalorder %s1925_s30, %s1550_s1  ;;  %p1552_p1 = pneg %p1931_p11 }
  0x7f   : > { %p1556_p13 = scmp.lt.u32.totalorder %s1925_s30, %s2100_s0  ;;  %p1557_p0 = scmp.lt.u32.totalorder %s1555_s17, %s1550_s1 }
  0x80   : > { %p1553_p3 = pnand %p1552_p1, %p1551_p12  ;;  %p1559_p4 = scmp.lt.u32.totalorder %s1550_s1, %s1925_s30 }
  0x81   : > { %p1558_p2 = por %p1557_p0, %p1556_p13 }
  0x82   : > { %p1554_p7 = pneg %p1553_p3 }
  0x83   : > { %p1560_p6 = por %p1559_p4, %p1558_p2 }
  0x85   : > { %p1561_p8 = pnand %p1560_p6, %p1554_p7 }
  0x87   : > { %1564 = shalt.err (!%p1561_p8)
}
  0x88   : > { %s1565_s13 = scalar_lea.vmem %s1927_s18, 128  ;;  %s1662_s8 = smov [#allocation2]  }
  0x89   : > { %p1566_p12 = scmp.ne.s32.totalorder %s1927_s18, %s1565_s13  ;;  %s1570_s19 = sshll.u32 %s1662_s8, 4  ;;  %s1571_s19 = int_to_ptr.vmem [resolvable:$false] %s1570_s19 }
  0x8a   : > { %s1572_s21 = scalar_lea.vmem %s1571_s19, 256  ;;  %p1573_p9 = scmp.lt.s32.totalorder %s1927_s18, %s1571_s19 }
  0x8b   : > { %p1568_p3 = pnand %p1566_p12, %p1552_p1  ;;  %p1574_p13 = scmp.lt.s32.totalorder %s1572_s21, %s1565_s13 }
  0x8d   : > { %p1569_p10 = pneg %p1568_p3  ;;  %p1575_p0 = por %p1574_p13, %p1573_p9 }
  0x8f   : > { %p1576_p2 = pnand %p1575_p0, %p1569_p10 }
  0x91   : > { %1579 = shalt.err (!%p1576_p2)
}
  0x92   : > { %1347 = dma.hbm_to_vmem [thread:$0]  (!%p1931_p11), %s1925_s30, 128, %s1927_s18, %s430_s12  }
  0x93   : > { %p2134_p7 = scmp.ne.s32.totalorder %s2124_s15, 0 }
  0x94   : > { %s1963_s1 = sand.u32 (!%p2134_p7), 1, %s1646_s26  }
  0x95   : > { %449 = sbr.rel (%p2134_p7) target bundleno = 1403 (0x57b), region = 72  ;;  %s1145_s17 = sshll.u32 (!%p2134_p7), %s1963_s1, 3 }
  0x96   : > { %s452_s24 = scalar_lea.sflag (!%p2134_p7), [#allocation3], %s1963_s1  ;;  %s455_s20 = scalar_lea.vmem (!%p2134_p7), [#allocation2], %s1145_s17 }
  0x9c   : > { %1625 = dma.done.wait (%p1906_p5), %s452_s24, 128  }
  0x9d   : > { %1627 = vsyncadd (%p1906_p5), %s452_s24, 4294967168  ;;  %p2135_p9 = scmp.eq.s32.totalorder %s1757_s14, 0 }
  0x9f   : > { %1629 = dma.done.wait (%p2135_p9), [#allocation6], 2048   ;;  %p2136_p10 = pmov %p2135_p9 }
  0xa0   : > { %p2137_p11 = pmov %p2135_p9 }
  0xa1   : > { %1631 = vsyncadd (%p2136_p10), [#allocation6], 4294965248 }
  0xa2   : > { %1633 = dma.done.wait (%p2137_p11), [#allocation9], 2048   ;;  %p2138_p1 = pmov %p2135_p9 }
  0xa3   : > { %v1663_v0 = vmov 0.0   ;;  %vm1664_vm0 = vmmov 0   ;;  %v1402_v1 = vld [vmem:[#allocation5] sm:$0xff]   ;;  %v1403_v2 = vld [vmem:[#allocation5 + $0x8] sm:$0xff]   ;;  %v1404_v3 = vld [vmem:[#allocation5 + $0x10] sm:$0xff]   ;;  %s2139_s24 = sld [smem:[#allocation17_spill]] }
  0xa4   : > { %1635 = vsyncadd (%p2138_p1), [#allocation9], 4294965248  ;;  %1231 = vmatprep.subr.bf16.mxu0 %v1663_v0  ;;  %1247 = vmatprep.mubr.msk.bf16.mxu0 %vm1664_vm0, %v1663_v0  ;;  %v1405_v4 = vld [vmem:[#allocation5 + $0x18] sm:$0xff]   ;;  %v1406_v5 = vld [vmem:[#allocation5 + $0x20] sm:$0xff]   ;;  %s2140_s22 = sld [smem:[#allocation18_spill]]  ;;  %s2141_s9 = sld [smem:[#allocation19_spill]] }
  0xa5   : > { %1251 = vmatprep.subr.bf16.mxu1 %v1663_v0  ;;  %1267 = vmatprep.mubr.msk.bf16.mxu1 %vm1664_vm0, %v1663_v0  ;;  %v1407_v6 = vld [vmem:[#allocation5 + $0x28] sm:$0xff]   ;;  %v1991_v7 = vld [vmem:[%s455_s20] sm:$0xff]  ;;  %v1410_v19 = vld [vmem:[#allocation7] sm:$0xff]   ;;  %s2142_s8 = sld [smem:[#allocation20_spill]]  ;;  %s1192_s19 = sshll.u32 %s1757_s14, 7 }
  0xa6   : > { %1232 = vmatpush3.bf16.msra.mxu0 %v1402_v1  ;;  %v1408_v8 = vld [vmem:[#allocation5 + $0x30] sm:$0xff]   ;;  %v516_v9 = vmul.f32 %v1991_v7, %v1991_v7  ;;  %v1409_v11 = vld [vmem:[#allocation5 + $0x38] sm:$0xff]   ;;  %1252 = vmatpush3.bf16.msra.mxu1 %v1410_v19  ;;  %v1411_v20 = vld [vmem:[#allocation7 + $0x8] sm:$0xff]   ;;  %s513_s21 = scalar_lea.vmem [#allocation11], %s1145_s17  ;;  %s1014_s14 = scalar_lea.sflag [#allocation4], %s1963_s1 }
  0xa7   : > { %1233 = vmatprep.subr.bf16.mxu0 %v1663_v0  ;;  %v1151_v13 = vld [vmem:[%s2102_s2] ss:$0 sm:$0xff]  ;;  %1253 = vmatprep.subr.bf16.mxu1 %v1663_v0  ;;  %v1413_v26 = vld [vmem:[#allocation7 + $0x18] sm:$0xff]   ;;  %v1414_v27 = vld [vmem:[#allocation7 + $0x20] sm:$0xff]   ;;  %p2144_p4 = scmp.ne.s32.totalorder %s2131_s10, 0  ;;  %s1665_s17 = smov [#allocation11]  }
  0xa8   : > { %v517_v10 = vmul.f32 0.088388346, %v516_v9  ;;  %v1412_v25 = vld [vmem:[#allocation7 + $0x10] sm:$0xff]   ;;  %v1415_v28 = vld [vmem:[#allocation7 + $0x28] sm:$0xff]   ;;  %v1417_v30 = vld [vmem:[#allocation7 + $0x38] sm:$0xff]  }
  0xa9   : > { %v1416_v29 = vld [vmem:[#allocation7 + $0x30] sm:$0xff]   ;;  %v1418_v31 = vld [vmem:[#allocation8] sm:$0xff]   ;;  %v1419_v32 = vld [vmem:[#allocation8 + $0x8] sm:$0xff]  }
  0xaa   : > { %1234 = vmatpush3.bf16.msra.mxu0 %v1403_v2  ;;  %v518_v12 = vpack.c.bf16 %v517_v10, %v517_v10  ;;  %1254 = vmatpush3.bf16.msra.mxu1 %v1411_v20  ;;  %v1420_v33 = vld [vmem:[#allocation8 + $0x10] sm:$0xff]   ;;  %v1421_v34 = vld [vmem:[#allocation8 + $0x18] sm:$0xff]   ;;  %v1422_v35 = vld [vmem:[#allocation8 + $0x20] sm:$0xff]  }
  0xab   : > { %1235 = vmatprep.subr.bf16.mxu0 %v1663_v0  ;;  %1255 = vmatprep.subr.bf16.mxu1 %v1663_v0  ;;  %v1423_v36 = vld [vmem:[#allocation8 + $0x28] sm:$0xff]   ;;  %v1160_v41 = vld [vmem:[%s2103_s3] ss:$0 sm:$0xff]  ;;  %v1425_v48 = vld [vmem:[#allocation8 + $0x38] sm:$0xff]  }
  0xac   : > { %v1161_v43 = vld [vmem:[%s2104_s4] ss:$0 sm:$0xff]  ;;  %v1426_v49 = vld [vmem:[#allocation10] sm:$0xff]   ;;  %v1427_v50 = vld [vmem:[#allocation10 + $0x8] sm:$0xff]  }
  0xad   : > { %v1424_v47 = vld [vmem:[#allocation8 + $0x30] sm:$0xff]   ;;  %v1429_v52 = vld [vmem:[#allocation10 + $0x18] sm:$0xff]   ;;  %v1430_v53 = vld [vmem:[#allocation10 + $0x20] sm:$0xff]  }
  0xae   : > { %1236 = vmatpush3.bf16.msra.mxu0 %v1404_v3  ;;  %1256 = vmatpush3.bf16.msra.mxu1 %v1412_v25  ;;  %v1428_v51 = vld [vmem:[#allocation10 + $0x10] sm:$0xff]   ;;  %v1431_v62 = vld [vmem:[#allocation10 + $0x28] sm:$0xff]   ;;  %v1433_v1 = vld [vmem:[#allocation10 + $0x38] sm:$0xff]  }
  0xaf   : > { %1237 = vmatprep.subr.bf16.mxu0 %v1663_v0  ;;  %1257 = vmatprep.subr.bf16.mxu1 %v1663_v0  ;;  %v1162_v54 = vld [vmem:[%s2106_s6] ss:$0 sm:$0xff] }
  0xb0   : > { %v1432_v63 = vld [vmem:[#allocation10 + $0x30] sm:$0xff]  }
  0xb1   : > { %v1171_v2 = vld [vmem:[%s2139_s24] ss:$0 sm:$0xff]  ;;  %s1027_s24 = sshll.u32 %s513_s21, 4  ;;  %s2059_s24 = int_to_ptr.vmem [resolvable:$true] %s1027_s24 }
  0xb2   : > { %1238 = vmatpush3.bf16.msra.mxu0 %v1405_v4  ;;  %1258 = vmatpush3.bf16.msra.mxu1 %v1413_v26  ;;  %v1180_v9 = vld [vmem:[%s2140_s22] ss:$0 sm:$0xff]  ;;  %s2143_s22 = sld [smem:[#allocation21_spill]]  ;;  %s1580_s18 = scalar_lea.vmem %s2059_s24, 128 }
  0xb3   : > { %1239 = vmatprep.subr.bf16.mxu0 %v1663_v0  ;;  %1259 = vmatprep.subr.bf16.mxu1 %v1663_v0  ;;  %p1581_p5 = scmp.ne.s32.totalorder %s2059_s24, %s1580_s18 }
  0xb5   : > { %p1582_p6 = pnand %p1581_p5, %p2144_p4 }
  0xb6   : > { %1240 = vmatpush3.bf16.msra.mxu0 %v1406_v5  ;;  %1260 = vmatpush3.bf16.msra.mxu1 %v1414_v27 }
  0xb7   : > { %1241 = vmatprep.subr.bf16.mxu0 %v1663_v0  ;;  %1261 = vmatprep.subr.bf16.mxu1 %v1663_v0  ;;  %p1583_p8 = pneg %p1582_p6 }
  0xb8   : > { %s2057_s30 = scalar_lea.hbm %s2143_s22, %s1192_s19 }
  0xba   : > { %1242 = vmatpush3.bf16.msra.mxu0 %v1407_v6  ;;  %1262 = vmatpush3.bf16.msra.mxu1 %v1415_v28 }
  0xbb   : > { %1243 = vmatprep.subr.bf16.mxu0 %v1663_v0  ;;  %1263 = vmatprep.subr.bf16.mxu1 %v1663_v0 }
  0xbe   : > { %1244 = vmatpush3.bf16.msra.mxu0 %v1408_v8  ;;  %1264 = vmatpush3.bf16.msra.mxu1 %v1416_v29 }
  0xbf   : > { %1245 = vmatprep.subr.bf16.mxu0 %v1663_v0  ;;  %1265 = vmatprep.subr.bf16.mxu1 %v1663_v0 }
  0xc2   : > { %1246 = vmatpush3.bf16.msra.mxu0 %v1409_v11  ;;  %1266 = vmatpush3.bf16.msra.mxu1 %v1417_v30 }
  0xc3   : > { %1271 = vmatprep.subr.bf16.mxu0 %v1663_v0  ;;  %1291 = vmatprep.subr.bf16.mxu1 %v1663_v0 }
  0xc5   : > { %1248 = vmatmul.mubr.bf16.vlgmr.msra.gmra.mrb[0].mxu0 %v518_v12 }
  0xc6   : > { %1287 = vmatprep.mubr.msk.bf16.mxu0 %vm1664_vm0, %v1663_v0  ;;  %1272 = vmatpush3.bf16.msra.mxu0 %v1418_v31 }
  0xc7   : > { %1273 = vmatprep.subr.bf16.mxu0 %v1663_v0 }
  0xca   : > { %1274 = vmatpush3.bf16.msra.mxu0 %v1419_v32 }
  0xcb   : > { %1275 = vmatprep.subr.bf16.mxu0 %v1663_v0 }
  0xce   : > { %1276 = vmatpush3.bf16.msra.mxu0 %v1420_v33 }
  0xcf   : > { %1277 = vmatprep.subr.bf16.mxu0 %v1663_v0 }
  0xd2   : > { %1278 = vmatpush3.bf16.msra.mxu0 %v1421_v34 }
  0xd3   : > { %1279 = vmatprep.subr.bf16.mxu0 %v1663_v0 }
  0xd6   : > { %1280 = vmatpush3.bf16.msra.mxu0 %v1422_v35 }
  0xd7   : > { %1281 = vmatprep.subr.bf16.mxu0 %v1663_v0 }
  0xda   : > { %1282 = vmatpush3.bf16.msra.mxu0 %v1423_v36 }
  0xdb   : > { %1283 = vmatprep.subr.bf16.mxu0 %v1663_v0 }
  0xde   : > { %1284 = vmatpush3.bf16.msra.mxu0 %v1424_v47 }
  0xdf   : > { %1285 = vmatprep.subr.bf16.mxu0 %v1663_v0 }
  0xe2   : > { %1286 = vmatpush3.bf16.msra.mxu0 %v1425_v48 }
 0x198   : > { %v624_v14 = vpop.f32.mrb[0].mxu0 }
 0x199   : > { %v625_v15 = vadd.f32 %v1151_v13, %v624_v14  ;;  %v1249_v16 = vpop.f32.mrb[1].mxu0  ;;  %v1182_v14 = vld [vmem:[%s2142_s8] ss:$0 sm:$0xff] }
 0x19a   : > { %v627_v17 = vpop.f32.mrb[2].mxu0 }
 0x19b   : > { %630 = vmax.xlane.f32.xlu0 %v625_v15  ;;  %v1250_v18 = vpop.f32.mrb[3].mxu0 }
 0x228   : > { %v631_v21 = vpop.xlane.xlu0 %630 }
 0x229   : > { %v632_v22 = vsub.f32 %v625_v15, %v631_v21 }
 0x22b   : > { %v633_v23 = vmul.f32 1.442695, %v632_v22 }
 0x22d   : > { %1434 = vpow2.f32 %v633_v23 }
 0x237   : > { %v1435_v24 = vpop.eup %1434 }
 0x238   : > { %635 = vadd.xlane.f32.xlu0 %v1435_v24 }
 0x2c5   : > { %v636_v37 = vpop.xlane.xlu0 %635 }
 0x2c6   : > { %1436 = vrcp.f32 %v636_v37 }
 0x2d0   : > { %v1437_v38 = vpop.eup %1436 }
 0x2d1   : > { %v638_v39 = vmul.f32 %v1437_v38, %v1435_v24 }
 0x2d3   : > { %v639_v40 = vmul.f32 %v638_v39, %v1991_v7 }
 0x2d5   : > { %v640_v42 = vadd.f32 %v639_v40, %v1991_v7 }
 0x2d7   : > { %v648_v44 = vmul.f32 %v1160_v41, %v640_v42 }
 0x2d9   : > { %v656_v45 = vadd.f32 %v1161_v43, %v648_v44 }
 0x2db   : > { %v657_v46 = vpack.c.bf16 %v656_v45, %v656_v45 }
 0x2dd   : > { %1268 = vmatmul.mubr.bf16.vlgmr.msra.gmra.mrb[0].mxu1 %v657_v46 }
 0x2de   : > { %1307 = vmatprep.mubr.msk.bf16.mxu1 %vm1664_vm0, %v1663_v0  ;;  %1292 = vmatpush3.bf16.msra.mxu1 %v1426_v49 }
 0x2df   : > { %1293 = vmatprep.subr.bf16.mxu1 %v1663_v0 }
 0x2e2   : > { %1294 = vmatpush3.bf16.msra.mxu1 %v1427_v50 }
 0x2e3   : > { %1295 = vmatprep.subr.bf16.mxu1 %v1663_v0 }
 0x2e6   : > { %1296 = vmatpush3.bf16.msra.mxu1 %v1428_v51 }
 0x2e7   : > { %1297 = vmatprep.subr.bf16.mxu1 %v1663_v0 }
 0x2ea   : > { %1298 = vmatpush3.bf16.msra.mxu1 %v1429_v52 }
 0x2eb   : > { %1299 = vmatprep.subr.bf16.mxu1 %v1663_v0 }
 0x2ee   : > { %1300 = vmatpush3.bf16.msra.mxu1 %v1430_v53 }
 0x2ef   : > { %1301 = vmatprep.subr.bf16.mxu1 %v1663_v0 }
 0x2f2   : > { %1302 = vmatpush3.bf16.msra.mxu1 %v1431_v62 }
 0x2f3   : > { %1303 = vmatprep.subr.bf16.mxu1 %v1663_v0 }
 0x2f6   : > { %1304 = vmatpush3.bf16.msra.mxu1 %v1432_v63 }
 0x2f7   : > { %1305 = vmatprep.subr.bf16.mxu1 %v1663_v0  ;;  %v1181_v0 = vld [vmem:[%s2141_s9] ss:$0 sm:$0xff]  ;;  %s1584_s9 = sshll.u32 %s1665_s17, 4  ;;  %s1585_s9 = int_to_ptr.vmem [resolvable:$false] %s1584_s9 }
 0x2f8   : > { %s1586_s12 = scalar_lea.vmem %s1585_s9, 256  ;;  %p1587_p12 = scmp.lt.s32.totalorder %s2059_s24, %s1585_s9 }
 0x2f9   : > { %p1588_p3 = scmp.lt.s32.totalorder %s1586_s12, %s1580_s18 }
 0x2fa   : > { %1306 = vmatpush3.bf16.msra.mxu1 %v1433_v1 }
 0x2fb   : > { %p1589_p13 = por %p1588_p3, %p1587_p12 }
 0x2fd   : > { %p1590_p0 = pnand %p1589_p13, %p1583_p8 }
 0x3b0   : > { %v763_v55 = vpop.f32.mrb[0].mxu1 }
 0x3b1   : > { %v764_v56 = vadd.f32 %v1162_v54, %v763_v55  ;;  %v1269_v57 = vpop.f32.mrb[1].mxu1 }
 0x3b2   : > { %v766_v58 = vpop.f32.mrb[2].mxu1 }
 0x3b3   : > { %v769_v59 = vmax.f32 %v764_v56, 0.0  ;;  %v1270_v60 = vpop.f32.mrb[3].mxu1 }
 0x3b5   : > { %v770_v61 = vpack.c.bf16 %v769_v59, %v769_v59 }
 0x3b7   : > { %1288 = vmatmul.mubr.bf16.vlgmr.msra.gmra.mrb[4].mxu0 %v770_v61 }
 0x48a   : > { %v876_v3 = vpop.f32.mrb[4].mxu0 }
 0x48b   : > { %v877_v4 = vadd.f32 %v1171_v2, %v876_v3  ;;  %v1289_v5 = vpop.f32.mrb[5].mxu0 }
 0x48c   : > { %v879_v6 = vpop.f32.mrb[6].mxu0 }
 0x48d   : > { %v882_v7 = vmax.f32 %v877_v4, 0.0  ;;  %v1290_v8 = vpop.f32.mrb[7].mxu0 }
 0x48f   : > { %v883_v10 = vadd.f32 %v882_v7, %v656_v45 }
 0x491   : > { %v891_v11 = vmul.f32 %v1180_v9, %v883_v10 }
 0x493   : > { %v899_v12 = vadd.f32 %v1181_v0, %v891_v11 }
 0x495   : > { %v900_v13 = vpack.c.bf16 %v899_v12, %v899_v12 }
 0x497   : > { %1308 = vmatmul.mubr.bf16.vlgmr.msra.gmra.mrb[4].mxu1 %v900_v13 }
 0x56a   : > { %v1006_v15 = vpop.f32.mrb[4].mxu1 }
 0x56b   : > { %v1007_v16 = vadd.f32 %v1182_v14, %v1006_v15  ;;  %v1309_v17 = vpop.f32.mrb[5].mxu1 }
 0x56c   : > { %v1009_v18 = vpop.f32.mrb[6].mxu1 }
 0x56d   : > { %1012 = vst [vmem:[%s513_s21] sm:$0xff] %v1007_v16  ;;  %v1310_v19 = vpop.f32.mrb[7].mxu1 }
 0x56e   : > { %1593 = shalt.err (!%p1590_p0)
}
 0x56f   : > { %s1594_s1 = scalar_lea.hbm %s2057_s30, 128  ;;  %s1598_s19 = scalar_lea.hbm %s2143_s22, 512 }
 0x570   : > { %p1595_p2 = scmp.ne.s32.totalorder %s2057_s30, %s1594_s1  ;;  %p1599_p10 = scmp.lt.u32.totalorder %s2057_s30, %s2143_s22 }
 0x571   : > { %p1600_p11 = scmp.lt.u32.totalorder %s1598_s19, %s1594_s1  ;;  %p1602_p5 = scmp.lt.u32.totalorder %s1594_s1, %s2057_s30 }
 0x572   : > { %p1596_p7 = pnand %p1595_p2, %p2144_p4 }
 0x573   : > { %p1601_p1 = por %p1600_p11, %p1599_p10 }
 0x574   : > { %p1597_p9 = pneg %p1596_p7 }
 0x575   : > { %p1603_p6 = por %p1602_p5, %p1601_p1 }
 0x577   : > { %p1604_p8 = pnand %p1603_p6, %p1597_p9 }
 0x579   : > { %1607 = shalt.err (!%p1604_p8)
}
 0x57a   : > { %1329 = dma.vmem_to_hbm [thread:$0]  (%p2144_p4), %s2059_s24, 128, %s2057_s30, %s1014_s14  }
 0x57b PF: > { %p1361_p12 = scmp.ge.s32.totalorder %s1654_s28, 2  ;;  %s1039_s15 = sand.u32 1, %s1642_s25  }
 0x57c   : > { %p2145_p3 = scmp.ne.s32.totalorder %s2132_s29, 0  ;;  %s1040_s18 = scalar_lea.sflag [#allocation4], %s1039_s15 }
 0x57e   : > { %p1349_p13 = pnand %p1361_p12, %p2145_p3 }
 0x580   : > { %1637 = dma.done.wait (!%p1349_p13), %s1040_s18, 128  }
 0x581   : > { %1639 = vsyncadd (!%p1349_p13), %s1040_s18, 4294967168  ;;  %p28_p0 = scmp.ge.s32.totalorder %s1887_s16, 6   ;;  %s2146_s25 = smov %s1646_s26 }
 0x582   : > { %s2147_s26 = smov %s1650_s27  ;;  %s2148_s27 = smov %s1898_s23 }
 0x583   : > { %s2149_s28 = smov %s1887_s16  ;;  %30 = sbr.rel (!%p28_p0) target bundleno = 14 (0xe), region = 133 }
 0x58a   :  { %1045 = vsyncpa [#allocation3], 1 }
 0x58b   :  { %1047 = vsyncpa [#allocation3 + $0x1], 1 }
 0x58c   :  { %1048 = vsyncpa [#allocation6], 1 }
 0x58d   :  { %1049 = vsyncpa [#allocation9], 1 }
 0x58e   :  { %1050 = vsyncpa [#allocation4], 1 }
 0x58f   :  { %1052 = vsyncpa [#allocation4 + $0x1], 1 }

</bundles_post_ra>
